<compile_context>
chip_gen: v5e
topology: v5e:2x2
jax: 0.10.0
libtpu: 0.0.40
codegen_flags: <defaults>
</compile_context>

<pallas_src>
import numpy as np
import jax
import jax.numpy as jnp
from jax import lax
from jax.experimental import pallas as pl
from jax.experimental.pallas import tpu as pltpu

_EPS = 1e-5


def _align(n, m):
    return ((n + m - 1) // m) * m


# --------------------- one-time parameter packing (numpy, OFF the per-call path) ---------------------

def _pack_params(params):
    """Fold conv taps, strides, pooling parities and eval-BatchNorm into dense slabs (runs once)."""
    w0 = np.asarray(params["conv0_w"], np.float32)[:, 0]            # (C1, 8, 16)
    b0 = np.asarray(params["conv0_b"], np.float32)
    w1 = np.asarray(params["conv1_w"], np.float32)                   # (C2, C1, 5, 5)
    b1 = np.asarray(params["conv1_b"], np.float32)
    fc1w = np.asarray(params["fc1_w"], np.float32)                   # (8*C2, H)
    fc1b = np.asarray(params["fc1_b"], np.float32)
    fc2w = np.asarray(params["fc2_w"], np.float32)                   # (H, L)
    fc2b = np.asarray(params["fc2_b"], np.float32)
    C1, C2 = w0.shape[0], w1.shape[0]
    H, L = fc1w.shape[1], fc2w.shape[1]
    assert fc1w.shape[0] == 8 * C2 and fc2w.shape[0] == H

    # conv0 band (384, 16*C1): row = ki*48 + w, col = wp*8*C1 + j*C1 + c.  Folds the width
    # taps, the stride-2 width subsampling and the MaxPool column parity into the RHS.
    # The 17th conv output column is intentionally never produced (floor-mode MaxPool2d(2)).
    N0 = 16 * C1
    W0 = np.zeros((8 * 48, N0), np.float32)
    for ki in range(8):
        for w in range(48):
            for wp in range(2):
                for j in range(8):
                    kw = w - 4 * j - 2 * wp
                    if 0 <= kw < 16:
                        col = wp * 8 * C1 + j * C1
                        W0[ki * 48 + w, col:col + C1] = w0[:, ki, kw]

    # conv1 matrix (64*C1, 32*C2): row = i*8*C1 + j*C1 + c (flattened encoder1 output),
    # col = (hp*2 + wp)*8*C2 + d*8 + ii*4 + jj   (torch NCHW flatten order per pool parity).
    K1, N1 = 64 * C1, 32 * C2
    W1 = np.zeros((K1, N1), np.float32)
    for i in range(8):
        for j in range(8):
            for hp in range(2):
                for wp in range(2):
                    for ii in range(2):
                        for jj in range(4):
                            kh = i - 4 * ii - 2 * hp + 2
                            kw = j - 2 * jj - wp + 2
                            if 0 <= kh < 5 and 0 <= kw < 5:
                                rows = i * 8 * C1 + j * C1 + np.arange(C1)
                                cols = (hp * 2 + wp) * 8 * C2 + np.arange(C2) * 8 + ii * 4 + jj
                                W1[np.ix_(rows, cols)] = w1[:, :, kh, kw].T    # [c, d]

    # ONE weight slab holding every MXU operand; segment row offsets are 16-aligned so the
    # in-kernel bf16 sublane slices stay aligned.
    F = 8 * C2
    o1 = _align(8 * 48, 16)
    of1 = _align(o1 + K1, 16)
    of2 = _align(of1 + F, 16)
    rows = _align(of2 + H, 16)
    WN = _align(max(N0, N1, H, L), 128)
    wslab = np.zeros((rows, WN), np.float32)
    wslab[0:8 * 48, 0:N0] = W0
    wslab[o1:o1 + K1, 0:N1] = W1
    wslab[of1:of1 + F, 0:H] = fc1w
    wslab[of2:of2 + H, 0:L] = fc2w

    # ONE epilogue slab: per-column (bias, BN scale, BN shift) vectors + fc biases (all f32).
    def bn(g, b, m, v):
        s = np.asarray(g, np.float32) / np.sqrt(np.asarray(v, np.float32) + _EPS)
        return s, np.asarray(b, np.float32) - np.asarray(m, np.float32) * s

    s1, t1 = bn(params["bn1_gamma"], params["bn1_beta"], params["bn1_mean"], params["bn1_var"])
    s2, t2 = bn(params["bn2_gamma"], params["bn2_beta"], params["bn2_mean"], params["bn2_var"])
    EW = max(8 * C1, F, H, L)
    eslab = np.zeros((8, EW), np.float32)
    eslab[0, :8 * C1] = np.tile(b0, 8)            # encoder1 cols = j*C1 + c
    eslab[1, :8 * C1] = np.tile(s1, 8)
    eslab[2, :8 * C1] = np.tile(t1, 8)
    eslab[3, :F] = np.repeat(b1, 8)               # encoder2 cols = d*8 + ii*4 + jj
    eslab[4, :F] = np.repeat(s2, 8)
    eslab[5, :F] = np.repeat(t2, 8)
    eslab[6, :H] = fc1b
    eslab[7, :L] = fc2b

    dims = dict(C1=C1, C2=C2, N0=N0, K1=K1, N1=N1, F=F, H=H, L=L, o1=o1, of1=of1, of2=of2)
    return wslab, eslab, dims


# ------------------------------------- fused kernel -------------------------------------

def _make_kernel(dims):
    C1 = dims["C1"]
    N0, K1, N1 = dims["N0"], dims["K1"], dims["N1"]
    F, H, L = dims["F"], dims["H"], dims["L"]
    o1, of1, of2 = dims["o1"], dims["of1"], dims["of2"]
    hw = 8 * C1          # encoder1 feature width per output row (pooled cols x channels)

    def kernel(xp_ref, w_ref, e_ref, o_ref, a1f_ref):
        f32, bf16 = jnp.float32, jnp.bfloat16
        B = o_ref.shape[0]
        Bh = 8 * B                                    # rows per pooling-row parity

        # ---- encoder1: conv0 + ReLU + MaxPool2d(2) + eval-BN = ONE MXU push + VPU epilogue ----
        r = jnp.dot(xp_ref[...], w_ref[0:384, 0:N0], preferred_element_type=f32)   # (2*Bh, N0)
        m = jnp.maximum(r[0:Bh, :], r[Bh:2 * Bh, :])          # max over pooling-row parity
        m1 = jnp.maximum(m[:, 0:hw], m[:, hw:N0])             # max over pooling-col parity
        a1 = (jnp.maximum(m1 + e_ref[0:1, 0:hw], 0.0)         # + bias, ReLU (commute with max)
              * e_ref[1:2, 0:hw] + e_ref[2:3, 0:hw])          # BatchNorm applied AFTER the pool
        # Restructure (8*B, hw) -> (B, 8*hw) through a tiny VMEM scratch: rows are ordered
        # (i, n), so each i-block is a contiguous sublane slice -> 8 cheap static stores.
        for i in range(8):
            a1f_ref[:, i * hw:(i + 1) * hw] = a1[i * B:(i + 1) * B, :]
        a1_flat = a1f_ref[...].astype(bf16)                    # (B, K1), cols = i*hw + j*C1 + c

        # ---- encoder2: conv1 + ReLU + MaxPool2d(2) + eval-BN = ONE MXU push + VPU epilogue ----
        r2 = jnp.dot(a1_flat, w_ref[o1:o1 + K1, 0:N1], preferred_element_type=f32)  # (B, 4*F)
        m2 = jnp.maximum(jnp.maximum(r2[:, 0:F], r2[:, F:2 * F]),
                         jnp.maximum(r2[:, 2 * F:3 * F], r2[:, 3 * F:4 * F]))
        feat = (jnp.maximum(m2 + e_ref[3:4, 0:F], 0.0)
                * e_ref[4:5, 0:F] + e_ref[5:6, 0:F]).astype(bf16)  # == torch x2.view(-1, 8*C2)

        # ---- output head: Linear -> ReLU -> Dropout(eval = identity) -> Linear ----
        h = jnp.maximum(jnp.dot(feat, w_ref[of1:of1 + F, 0:H], preferred_element_type=f32)
                        + e_ref[6:7, 0:H], 0.0).astype(bf16)
        # TODO(synk): nn.Dropout(0.1) is the identity in eval mode, so it is omitted here.
        o_ref[...] = (jnp.dot(h, w_ref[of2:of2 + H, 0:L], preferred_element_type=f32)
                      + e_ref[7:8, 0:L])

    return kernel


# conv0 row-gather indices: padded input row = 4*i + 2*hp + ki (hp = pool-row parity,
# i = pooled output row, ki = conv0 kernel row).  Max index is 37 < 38 padded rows, so the
# symmetric (4, 4) H-padding is never overrun.
_ROW_IDX = (2 * np.arange(2)[:, None, None] + 4 * np.arange(8)[None, :, None]
            + np.arange(8)[None, None, :]).astype(np.int32).reshape(-1)     # order (hp, i, ki)
assert int(_ROW_IDX.max()) == 37


def make_cnn_forward(params):
    """Pack parameters ONCE (numpy) and return a jitted forward(x) for the fused kernel."""
    wslab_np, eslab_np, dims = _pack_params(params)
    wslab = jnp.asarray(wslab_np, dtype=jnp.bfloat16)   # MXU operands in bf16 (f32 accumulate)
    eslab = jnp.asarray(eslab_np, dtype=jnp.float32)    # VPU epilogue stays f32 (v5e-safe)
    kernel = _make_kernel(dims)
    K1, L = dims["K1"], dims["L"]

    def _fwd(x, wslab, eslab):
        assert x.shape[2:] == (48, 30), "kernel is specialized to the module's 48x30 input"
        B = x.shape[0]
        # x[:, :1].permute(0,1,3,2) -> pad H by (4,4) -> gather the conv0 row windows so the
        # kernel's only activation operand is a lane-dense (2*8*B, 384 = 3*128) patch slab.
        xt = jnp.transpose(x[:, 0].astype(jnp.float32), (0, 2, 1))      # (B, 30, 48)
        xpad = jnp.pad(xt, ((0, 0), (4, 4), (0, 0)))                    # (B, 38, 48)
        g = xpad[:, _ROW_IDX, :].reshape(B, 2, 8, 8 * 48)               # (n, hp, i, ki*48+w)
        xpatch = jnp.transpose(g, (1, 2, 0, 3)).reshape(2 * 8 * B, 8 * 48)
        xpatch = xpatch.astype(jnp.bfloat16)                            # rows = hp*8B + i*B + n

        inputs = (xpatch, wslab, eslab)
        return pl.pallas_call(
            kernel,
            grid=(1,),                 # whole net in one grid step; at B=2 one TensorCore is plenty
            in_specs=[pl.BlockSpec(a.shape, lambda gi, _nd=a.ndim: (0,) * _nd) for a in inputs],
            out_specs=pl.BlockSpec((B, L), lambda gi: (0, 0)),
            out_shape=jax.ShapeDtypeStruct((B, L), jnp.float32),
            scratch_shapes=[pltpu.VMEM((B, K1), jnp.float32)],
            compiler_params=pltpu.CompilerParams(dimension_semantics=("arbitrary",)),
        )(*inputs)

    fwd = jax.jit(_fwd)
    return lambda x: fwd(x, wslab, eslab)


# ------------------------------ pure-JAX reference (verification) ------------------------------

def _reference_forward(x, params):
    hi = lax.Precision.HIGHEST
    y = jnp.transpose(x[:, :1].astype(jnp.float32), (0, 1, 3, 2))           # (B, 1, 30, 48)
    y = lax.conv_general_dilated(y, params["conv0_w"], (2, 2), ((4, 4), (0, 0)),
                                 dimension_numbers=("NCHW", "OIHW", "NCHW"),
                                 precision=hi) + params["conv0_b"][None, :, None, None]
    y = jnp.maximum(y, 0.0)                                                  # (B, C1, 16, 17)
    y = y[..., :16, :16].reshape(y.shape[0], y.shape[1], 8, 2, 8, 2).max(axis=(3, 5))
    s1 = params["bn1_gamma"] / jnp.sqrt(params["bn1_var"] + _EPS)
    y = (y - params["bn1_mean"][None, :, None, None]) * s1[None, :, None, None] \
        + params["bn1_beta"][None, :, None, None]
    z = lax.conv_general_dilated(y, params["conv1_w"], (2, 1), ((2, 2), (2, 2)),
                                 dimension_numbers=("NCHW", "OIHW", "NCHW"),
                                 precision=hi) + params["conv1_b"][None, :, None, None]
    z = jnp.maximum(z, 0.0)                                                  # (B, C2, 4, 8)
    z = z.reshape(z.shape[0], z.shape[1], 2, 2, 4, 2).max(axis=(3, 5))
    s2 = params["bn2_gamma"] / jnp.sqrt(params["bn2_var"] + _EPS)
    z = (z - params["bn2_mean"][None, :, None, None]) * s2[None, :, None, None] \
        + params["bn2_beta"][None, :, None, None]
    f = z.reshape(z.shape[0], -1)
    h = jnp.maximum(jnp.dot(f, params["fc1_w"], precision=hi) + params["fc1_b"], 0.0)
    return jnp.dot(h, params["fc2_w"], precision=hi) + params["fc2_b"]


# ----------------------------------------- parameters -----------------------------------------

def init_params(key, num_labels, num_maps1, num_maps2, num_hidden_input, hidden_size):
    ks = jax.random.split(key, 16)
    p = {}
    p["conv0_w"] = 0.1 * jax.random.normal(ks[0], (num_maps1, 1, 8, 16), jnp.float32)
    p["conv0_b"] = 0.1 * jax.random.normal(ks[1], (num_maps1,), jnp.float32)
    p["bn1_gamma"] = 1.0 + 0.1 * jax.random.normal(ks[2], (num_maps1,), jnp.float32)
    p["bn1_beta"] = 0.1 * jax.random.normal(ks[3], (num_maps1,), jnp.float32)
    p["bn1_mean"] = 0.1 * jax.random.normal(ks[4], (num_maps1,), jnp.float32)
    p["bn1_var"] = jnp.abs(1.0 + 0.1 * jax.random.normal(ks[5], (num_maps1,), jnp.float32))
    p["conv1_w"] = 0.1 * jax.random.normal(ks[6], (num_maps2, num_maps1, 5, 5), jnp.float32)
    p["conv1_b"] = 0.1 * jax.random.normal(ks[7], (num_maps2,), jnp.float32)
    p["bn2_gamma"] = 1.0 + 0.1 * jax.random.normal(ks[8], (num_maps2,), jnp.float32)
    p["bn2_beta"] = 0.1 * jax.random.normal(ks[9], (num_maps2,), jnp.float32)
    p["bn2_mean"] = 0.1 * jax.random.normal(ks[10], (num_maps2,), jnp.float32)
    p["bn2_var"] = jnp.abs(1.0 + 0.1 * jax.random.normal(ks[11], (num_maps2,), jnp.float32))
    p["fc1_w"] = 0.1 * jax.random.normal(ks[12], (num_hidden_input, hidden_size), jnp.float32)
    p["fc1_b"] = 0.1 * jax.random.normal(ks[13], (hidden_size,), jnp.float32)
    p["fc2_w"] = 0.1 * jax.random.normal(ks[14], (hidden_size, num_labels), jnp.float32)
    p["fc2_b"] = 0.1 * jax.random.normal(ks[15], (num_labels,), jnp.float32)
    return p


if __name__ == "__main__":
    # Input (B=2, C=2, H=48, W=30).  After slice+permute conv0 sees (2, 1, 30, 48);
    # encoder1 -> (2, 4, 8, 8); encoder2 -> (2, 8, 2, 4); flatten -> (2, 64) = num_hidden_input.
    num_labels, num_maps1, num_maps2 = 10, 4, 8
    hidden_size = 32
    num_hidden_input = num_maps2 * 2 * 4  # 64

    key = jax.random.PRNGKey(0)
    kx, kp = jax.random.split(key)
    x = jax.random.normal(kx, (2, 2, 48, 30), jnp.float32)
    params = init_params(kp, num_labels, num_maps1, num_maps2, num_hidden_input, hidden_size)

    forward = make_cnn_forward(params)        # one-time packing; returns jitted forward(x)
    out = jax.block_until_ready(forward(x))
    assert out.shape == (2, num_labels), out.shape
    assert out.dtype == jnp.float32

    # Verify against a pure-JAX f32 reference (bf16 MXU operands => small rounding delta).
    ref = _reference_forward(x, params)
    err = float(jnp.max(jnp.abs(out - ref)))
    assert err < 1.5e-1, f"max |kernel - reference| = {err}"
    print("KERNEL_OK")
</pallas_src>

<mosaic_0001>
module attributes {stable_mosaic.version = 11 : i64} {
  func.func @kernel(%arg0: i32, %arg1: memref<32x384xbf16, #tpu.memory_space<vmem>>, %arg2: memref<736x256xbf16, #tpu.memory_space<vmem>>, %arg3: memref<8x64xf32, #tpu.memory_space<vmem>>, %arg4: memref<2x10xf32, #tpu.memory_space<vmem>>, %arg5: memref<2x256xf32, #tpu.memory_space<vmem>>) attributes {dimension_semantics = [#tpu.dimension_semantics<arbitrary>], iteration_bounds = array<i64: 1>, scalar_prefetch = 0 : i64, scratch_operands = 1 : i64, tpu.core_type = #tpu.core_type<tc>, window_params = [{pipeline_mode = #tpu.pipeline_mode<synchronous>, transform_indices = @transform_0, window_bounds = array<i64: 32, 384>}, {pipeline_mode = #tpu.pipeline_mode<synchronous>, transform_indices = @transform_1, window_bounds = array<i64: 736, 256>}, {pipeline_mode = #tpu.pipeline_mode<synchronous>, transform_indices = @transform_2, window_bounds = array<i64: 8, 64>}, {pipeline_mode = #tpu.pipeline_mode<synchronous>, transform_indices = @transform_3, window_bounds = array<i64: 2, 10>}]} {
    %c0 = arith.constant 0 : index
    %c0_0 = arith.constant 0 : index
    %0 = vector.load %arg1[%c0, %c0_0] : memref<32x384xbf16, #tpu.memory_space<vmem>>, vector<32x384xbf16>
    %c0_1 = arith.constant 0 : index
    %c0_2 = arith.constant 0 : index
    %1 = vector.load %arg2[%c0_1, %c0_2] : memref<736x256xbf16, #tpu.memory_space<vmem>>, vector<384x64xbf16>
    %cst = arith.constant dense<0.000000e+00> : vector<32x64xf32>
    %2 = tpu.matmul %0, %1, %cst {dimension_numbers = #tpu.dot_dimension_numbers<[1], [0], [0], [1], [0, 0, 1, 1], [], []>} : vector<32x384xbf16>, vector<384x64xbf16>, vector<32x64xf32> -> vector<32x64xf32>
    %3 = vector.extract_strided_slice %2 {offsets = [0, 0], sizes = [16, 64], strides = [1, 1]} : vector<32x64xf32> to vector<16x64xf32>
    %4 = vector.extract_strided_slice %2 {offsets = [16, 0], sizes = [16, 64], strides = [1, 1]} : vector<32x64xf32> to vector<16x64xf32>
    %5 = arith.maximumf %3, %4 : vector<16x64xf32>
    %6 = vector.extract_strided_slice %5 {offsets = [0, 0], sizes = [16, 32], strides = [1, 1]} : vector<16x64xf32> to vector<16x32xf32>
    %7 = vector.extract_strided_slice %5 {offsets = [0, 32], sizes = [16, 32], strides = [1, 1]} : vector<16x64xf32> to vector<16x32xf32>
    %8 = arith.maximumf %6, %7 : vector<16x32xf32>
    %c0_3 = arith.constant 0 : index
    %c0_4 = arith.constant 0 : index
    %9 = vector.load %arg3[%c0_3, %c0_4] : memref<8x64xf32, #tpu.memory_space<vmem>>, vector<1x32xf32>
    %10 = vector.broadcast %9 : vector<1x32xf32> to vector<16x32xf32>
    %11 = arith.addf %8, %10 : vector<16x32xf32>
    %cst_5 = arith.constant 0.000000e+00 : f32
    %12 = vector.broadcast %cst_5 : f32 to vector<16x32xf32>
    %13 = arith.maximumf %11, %12 : vector<16x32xf32>
    %c1 = arith.constant 1 : index
    %c0_6 = arith.constant 0 : index
    %14 = vector.load %arg3[%c1, %c0_6] : memref<8x64xf32, #tpu.memory_space<vmem>>, vector<1x32xf32>
    %15 = vector.broadcast %14 : vector<1x32xf32> to vector<16x32xf32>
    %16 = arith.mulf %13, %15 : vector<16x32xf32>
    %c2 = arith.constant 2 : index
    %c0_7 = arith.constant 0 : index
    %17 = vector.load %arg3[%c2, %c0_7] : memref<8x64xf32, #tpu.memory_space<vmem>>, vector<1x32xf32>
    %18 = vector.broadcast %17 : vector<1x32xf32> to vector<16x32xf32>
    %19 = arith.addf %16, %18 : vector<16x32xf32>
    %20 = vector.extract_strided_slice %19 {offsets = [0, 0], sizes = [2, 32], strides = [1, 1]} : vector<16x32xf32> to vector<2x32xf32>
    %c0_8 = arith.constant 0 : index
    %c0_9 = arith.constant 0 : index
    %21 = vector.load %arg5[%c0_8, %c0_9] : memref<2x256xf32, #tpu.memory_space<vmem>>, vector<2x32xf32>
    tpu.vector_store %arg5[%c0_8, %c0_9], %20 {strides = array<i32>} : memref<2x256xf32, #tpu.memory_space<vmem>>, vector<2x32xf32>,
    %22 = vector.extract_strided_slice %19 {offsets = [2, 0], sizes = [2, 32], strides = [1, 1]} : vector<16x32xf32> to vector<2x32xf32>
    %c0_10 = arith.constant 0 : index
    %c32 = arith.constant 32 : index
    %23 = vector.load %arg5[%c0_10, %c32] : memref<2x256xf32, #tpu.memory_space<vmem>>, vector<2x32xf32>
    tpu.vector_store %arg5[%c0_10, %c32], %22 {strides = array<i32>} : memref<2x256xf32, #tpu.memory_space<vmem>>, vector<2x32xf32>,
    %24 = vector.extract_strided_slice %19 {offsets = [4, 0], sizes = [2, 32], strides = [1, 1]} : vector<16x32xf32> to vector<2x32xf32>
    %c0_11 = arith.constant 0 : index
    %c64 = arith.constant 64 : index
    %25 = vector.load %arg5[%c0_11, %c64] : memref<2x256xf32, #tpu.memory_space<vmem>>, vector<2x32xf32>
    tpu.vector_store %arg5[%c0_11, %c64], %24 {strides = array<i32>} : memref<2x256xf32, #tpu.memory_space<vmem>>, vector<2x32xf32>,
    %26 = vector.extract_strided_slice %19 {offsets = [6, 0], sizes = [2, 32], strides = [1, 1]} : vector<16x32xf32> to vector<2x32xf32>
    %c0_12 = arith.constant 0 : index
    %c96 = arith.constant 96 : index
    %27 = vector.load %arg5[%c0_12, %c96] : memref<2x256xf32, #tpu.memory_space<vmem>>, vector<2x32xf32>
    tpu.vector_store %arg5[%c0_12, %c96], %26 {strides = array<i32>} : memref<2x256xf32, #tpu.memory_space<vmem>>, vector<2x32xf32>,
    %28 = vector.extract_strided_slice %19 {offsets = [8, 0], sizes = [2, 32], strides = [1, 1]} : vector<16x32xf32> to vector<2x32xf32>
    %c0_13 = arith.constant 0 : index
    %c128 = arith.constant 128 : index
    %29 = vector.load %arg5[%c0_13, %c128] : memref<2x256xf32, #tpu.memory_space<vmem>>, vector<2x32xf32>
    tpu.vector_store %arg5[%c0_13, %c128], %28 {strides = array<i32>} : memref<2x256xf32, #tpu.memory_space<vmem>>, vector<2x32xf32>,
    %30 = vector.extract_strided_slice %19 {offsets = [10, 0], sizes = [2, 32], strides = [1, 1]} : vector<16x32xf32> to vector<2x32xf32>
    %c0_14 = arith.constant 0 : index
    %c160 = arith.constant 160 : index
    %31 = vector.load %arg5[%c0_14, %c160] : memref<2x256xf32, #tpu.memory_space<vmem>>, vector<2x32xf32>
    tpu.vector_store %arg5[%c0_14, %c160], %30 {strides = array<i32>} : memref<2x256xf32, #tpu.memory_space<vmem>>, vector<2x32xf32>,
    %32 = vector.extract_strided_slice %19 {offsets = [12, 0], sizes = [2, 32], strides = [1, 1]} : vector<16x32xf32> to vector<2x32xf32>
    %c0_15 = arith.constant 0 : index
    %c192 = arith.constant 192 : index
    %33 = vector.load %arg5[%c0_15, %c192] : memref<2x256xf32, #tpu.memory_space<vmem>>, vector<2x32xf32>
    tpu.vector_store %arg5[%c0_15, %c192], %32 {strides = array<i32>} : memref<2x256xf32, #tpu.memory_space<vmem>>, vector<2x32xf32>,
    %34 = vector.extract_strided_slice %19 {offsets = [14, 0], sizes = [2, 32], strides = [1, 1]} : vector<16x32xf32> to vector<2x32xf32>
    %c0_16 = arith.constant 0 : index
    %c224 = arith.constant 224 : index
    %35 = vector.load %arg5[%c0_16, %c224] : memref<2x256xf32, #tpu.memory_space<vmem>>, vector<2x32xf32>
    tpu.vector_store %arg5[%c0_16, %c224], %34 {strides = array<i32>} : memref<2x256xf32, #tpu.memory_space<vmem>>, vector<2x32xf32>,
    %c0_17 = arith.constant 0 : index
    %c0_18 = arith.constant 0 : index
    %36 = vector.load %arg5[%c0_17, %c0_18] : memref<2x256xf32, #tpu.memory_space<vmem>>, vector<2x256xf32>
    %37 = arith.truncf %36 : vector<2x256xf32> to vector<2x256xbf16>
    %c384 = arith.constant 384 : index
    %c0_19 = arith.constant 0 : index
    %38 = vector.load %arg2[%c384, %c0_19] : memref<736x256xbf16, #tpu.memory_space<vmem>>, vector<256x256xbf16>
    %cst_20 = arith.constant dense<0.000000e+00> : vector<2x256xf32>
    %39 = tpu.matmul %37, %38, %cst_20 {dimension_numbers = #tpu.dot_dimension_numbers<[1], [0], [0], [1], [0, 0, 1, 1], [], []>} : vector<2x256xbf16>, vector<256x256xbf16>, vector<2x256xf32> -> vector<2x256xf32>
    %40 = vector.extract_strided_slice %39 {offsets = [0, 0], sizes = [2, 64], strides = [1, 1]} : vector<2x256xf32> to vector<2x64xf32>
    %41 = vector.extract_strided_slice %39 {offsets = [0, 64], sizes = [2, 64], strides = [1, 1]} : vector<2x256xf32> to vector<2x64xf32>
    %42 = arith.maximumf %40, %41 : vector<2x64xf32>
    %43 = vector.extract_strided_slice %39 {offsets = [0, 128], sizes = [2, 64], strides = [1, 1]} : vector<2x256xf32> to vector<2x64xf32>
    %44 = vector.extract_strided_slice %39 {offsets = [0, 192], sizes = [2, 64], strides = [1, 1]} : vector<2x256xf32> to vector<2x64xf32>
    %45 = arith.maximumf %43, %44 : vector<2x64xf32>
    %46 = arith.maximumf %42, %45 : vector<2x64xf32>
    %c3 = arith.constant 3 : index
    %c0_21 = arith.constant 0 : index
    %47 = vector.load %arg3[%c3, %c0_21] : memref<8x64xf32, #tpu.memory_space<vmem>>, vector<1x64xf32>
    %48 = vector.broadcast %47 : vector<1x64xf32> to vector<2x64xf32>
    %49 = arith.addf %46, %48 : vector<2x64xf32>
    %cst_22 = arith.constant 0.000000e+00 : f32
    %50 = vector.broadcast %cst_22 : f32 to vector<2x64xf32>
    %51 = arith.maximumf %49, %50 : vector<2x64xf32>
    %c4 = arith.constant 4 : index
    %c0_23 = arith.constant 0 : index
    %52 = vector.load %arg3[%c4, %c0_23] : memref<8x64xf32, #tpu.memory_space<vmem>>, vector<1x64xf32>
    %53 = vector.broadcast %52 : vector<1x64xf32> to vector<2x64xf32>
    %54 = arith.mulf %51, %53 : vector<2x64xf32>
    %c5 = arith.constant 5 : index
    %c0_24 = arith.constant 0 : index
    %55 = vector.load %arg3[%c5, %c0_24] : memref<8x64xf32, #tpu.memory_space<vmem>>, vector<1x64xf32>
    %56 = vector.broadcast %55 : vector<1x64xf32> to vector<2x64xf32>
    %57 = arith.addf %54, %56 : vector<2x64xf32>
    %58 = arith.truncf %57 : vector<2x64xf32> to vector<2x64xbf16>
    %c640 = arith.constant 640 : index
    %c0_25 = arith.constant 0 : index
    %59 = vector.load %arg2[%c640, %c0_25] : memref<736x256xbf16, #tpu.memory_space<vmem>>, vector<64x32xbf16>
    %cst_26 = arith.constant dense<0.000000e+00> : vector<2x32xf32>
    %60 = tpu.matmul %58, %59, %cst_26 {dimension_numbers = #tpu.dot_dimension_numbers<[1], [0], [0], [1], [0, 0, 1, 1], [], []>} : vector<2x64xbf16>, vector<64x32xbf16>, vector<2x32xf32> -> vector<2x32xf32>
    %c6 = arith.constant 6 : index
    %c0_27 = arith.constant 0 : index
    %61 = vector.load %arg3[%c6, %c0_27] : memref<8x64xf32, #tpu.memory_space<vmem>>, vector<1x32xf32>
    %62 = vector.broadcast %61 : vector<1x32xf32> to vector<2x32xf32>
    %63 = arith.addf %60, %62 : vector<2x32xf32>
    %cst_28 = arith.constant 0.000000e+00 : f32
    %64 = vector.broadcast %cst_28 : f32 to vector<2x32xf32>
    %65 = arith.maximumf %63, %64 : vector<2x32xf32>
    %66 = arith.truncf %65 : vector<2x32xf32> to vector<2x32xbf16>
    %c704 = arith.constant 704 : index
    %c0_29 = arith.constant 0 : index
    %67 = vector.load %arg2[%c704, %c0_29] : memref<736x256xbf16, #tpu.memory_space<vmem>>, vector<32x10xbf16>
    %cst_30 = arith.constant dense<0.000000e+00> : vector<2x10xf32>
    %68 = tpu.matmul %66, %67, %cst_30 {dimension_numbers = #tpu.dot_dimension_numbers<[1], [0], [0], [1], [0, 0, 1, 1], [], []>} : vector<2x32xbf16>, vector<32x10xbf16>, vector<2x10xf32> -> vector<2x10xf32>
    %c7 = arith.constant 7 : index
    %c0_31 = arith.constant 0 : index
    %69 = vector.load %arg3[%c7, %c0_31] : memref<8x64xf32, #tpu.memory_space<vmem>>, vector<1x10xf32>
    %70 = vector.broadcast %69 : vector<1x10xf32> to vector<2x10xf32>
    %71 = arith.addf %68, %70 : vector<2x10xf32>
    %c0_32 = arith.constant 0 : index
    %c0_33 = arith.constant 0 : index
    %72 = vector.load %arg4[%c0_32, %c0_33] : memref<2x10xf32, #tpu.memory_space<vmem>>, vector<2x10xf32>
    tpu.vector_store %arg4[%c0_32, %c0_33], %71 {strides = array<i32>} : memref<2x10xf32, #tpu.memory_space<vmem>>, vector<2x10xf32>,
    return
  }
  func.func @transform_0(%arg0: i32) -> (i32, i32) {
    %c0_i32 = arith.constant 0 : i32
    %c0_i32_0 = arith.constant 0 : i32
    %c0_i32_1 = arith.constant 0 : i32
    return %c0_i32, %c0_i32_0 : i32, i32
  }
  func.func @transform_1(%arg0: i32) -> (i32, i32) {
    %c0_i32 = arith.constant 0 : i32
    %c0_i32_0 = arith.constant 0 : i32
    %c0_i32_1 = arith.constant 0 : i32
    return %c0_i32, %c0_i32_0 : i32, i32
  }
  func.func @transform_2(%arg0: i32) -> (i32, i32) {
    %c0_i32 = arith.constant 0 : i32
    %c0_i32_0 = arith.constant 0 : i32
    %c0_i32_1 = arith.constant 0 : i32
    return %c0_i32, %c0_i32_0 : i32, i32
  }
  func.func @transform_3(%arg0: i32) -> (i32, i32) {
    %c0_i32 = arith.constant 0 : i32
    %c0_i32_0 = arith.constant 0 : i32
    %c0_i32_1 = arith.constant 0 : i32
    return %c0_i32, %c0_i32_0 : i32, i32
  }
}

</mosaic_0001>

<bundles_post_ra>
// kernel: _fwd.1
= control target key start
LH: loop header
LB: loop body
LE: loop exit
PB: predicated region body
PF: predicated region fallthrough
CT: control target
= control target key end

     0   :  { %s1615_s0 = inlined_call_operand.vmem [shape: bf16[32,384], index: 0, kind: input, shape index: {}]   ;;  %s1616_s1 = inlined_call_operand.vmem [shape: bf16[736,256], index: 1, kind: input, shape index: {}]   ;;  %s1617_s2 = inlined_call_operand.vmem [shape: f32[8,64], index: 2, kind: input, shape index: {}]   ;;  %s1618_s3 = inlined_call_operand.hbm [shape: f32[2,10], index: 3, kind: output, shape index: {}]  }
   0x1   :  { %v816_v0 = vld [vmem:[%s1616_s1 + $0x70] sm:$0xf]  ;;  %v1049_v1 = vld [vmem:[%s1616_s1 + $0x74] sm:$0xf0]  ;;  %v812_v9 = vld [vmem:[%s1616_s1 + $0x60] sm:$0xf] }
   0x2   :  { %v848_v2 = vld [vmem:[%s1616_s1 + $0xf0] sm:$0xf]  ;;  %v817_v3 = vor.u32 %v1049_v1, %v816_v0  ;;  %v1057_v4 = vld [vmem:[%s1616_s1 + $0xf4] sm:$0xf0]  ;;  %v1048_v10 = vld [vmem:[%s1616_s1 + $0x64] sm:$0xf0] }
   0x3   :  { %v880_v5 = vld [vmem:[%s1616_s1 + $0x170] sm:$0xf]  ;;  %v1065_v6 = vld [vmem:[%s1616_s1 + $0x174] sm:$0xf0]  ;;  %v849_v7 = vor.u32 %v1057_v4, %v848_v2  ;;  %v844_v11 = vld [vmem:[%s1616_s1 + $0xe0] sm:$0xf]  ;;  %v813_v12 = vor.u32 %v1048_v10, %v812_v9 }
   0x4   :  { %v881_v8 = vor.u32 %v1065_v6, %v880_v5  ;;  %248 = vmatpush.bf16.msra.mxu0 %v817_v3  ;;  %v1056_v13 = vld [vmem:[%s1616_s1 + $0xe4] sm:$0xf0]  ;;  %v876_v14 = vld [vmem:[%s1616_s1 + $0x160] sm:$0xf]  ;;  %v808_v18 = vld [vmem:[%s1616_s1 + $0x50] sm:$0xf] }
   0x5   :  { %v1064_v15 = vld [vmem:[%s1616_s1 + $0x164] sm:$0xf0]  ;;  %267 = vmatpush.bf16.msra.mxu1 %v849_v7  ;;  %v845_v16 = vor.u32 %v1056_v13, %v844_v11  ;;  %v1047_v19 = vld [vmem:[%s1616_s1 + $0x54] sm:$0xf0]  ;;  %v840_v20 = vld [vmem:[%s1616_s1 + $0xd0] sm:$0xf] }
   0x6   :  { %286 = vmatpush.bf16.msra.mxu2 %v881_v8  ;;  %v877_v17 = vor.u32 %v1064_v15, %v876_v14  ;;  %v1055_v21 = vld [vmem:[%s1616_s1 + $0xd4] sm:$0xf0]  ;;  %v872_v22 = vld [vmem:[%s1616_s1 + $0x150] sm:$0xf]  ;;  %v809_v24 = vor.u32 %v1047_v19, %v808_v18  ;;  %v804_v27 = vld [vmem:[%s1616_s1 + $0x40] sm:$0xf] }
   0x7   :  { %v1063_v23 = vld [vmem:[%s1616_s1 + $0x154] sm:$0xf0]  ;;  %v841_v25 = vor.u32 %v1055_v21, %v840_v20  ;;  %v1046_v28 = vld [vmem:[%s1616_s1 + $0x44] sm:$0xf0]  ;;  %v836_v29 = vld [vmem:[%s1616_s1 + $0xc0] sm:$0xf] }
   0x8   :  { %249 = vmatpush.bf16.msra.mxu0 %v813_v12  ;;  %v873_v26 = vor.u32 %v1063_v23, %v872_v22  ;;  %v1054_v30 = vld [vmem:[%s1616_s1 + $0xc4] sm:$0xf0]  ;;  %v868_v31 = vld [vmem:[%s1616_s1 + $0x140] sm:$0xf]  ;;  %v805_v33 = vor.u32 %v1046_v28, %v804_v27  ;;  %v800_v36 = vld [vmem:[%s1616_s1 + $0x30] sm:$0xf] }
   0x9   :  { %268 = vmatpush.bf16.msra.mxu1 %v845_v16  ;;  %v1062_v32 = vld [vmem:[%s1616_s1 + $0x144] sm:$0xf0]  ;;  %v837_v34 = vor.u32 %v1054_v30, %v836_v29  ;;  %v1045_v37 = vld [vmem:[%s1616_s1 + $0x34] sm:$0xf0]  ;;  %v832_v38 = vld [vmem:[%s1616_s1 + $0xb0] sm:$0xf] }
   0xa   :  { %287 = vmatpush.bf16.msra.mxu2 %v877_v17  ;;  %v869_v35 = vor.u32 %v1062_v32, %v868_v31  ;;  %v1053_v39 = vld [vmem:[%s1616_s1 + $0xb4] sm:$0xf0]  ;;  %v864_v40 = vld [vmem:[%s1616_s1 + $0x130] sm:$0xf]  ;;  %v801_v42 = vor.u32 %v1045_v37, %v800_v36  ;;  %v796_v45 = vld [vmem:[%s1616_s1 + $0x20] sm:$0xf] }
   0xb   :  { %v1061_v41 = vld [vmem:[%s1616_s1 + $0x134] sm:$0xf0]  ;;  %v833_v43 = vor.u32 %v1053_v39, %v832_v38  ;;  %v1044_v46 = vld [vmem:[%s1616_s1 + $0x24] sm:$0xf0]  ;;  %v828_v47 = vld [vmem:[%s1616_s1 + $0xa0] sm:$0xf] }
   0xc   :  { %250 = vmatpush.bf16.msra.mxu0 %v809_v24  ;;  %v865_v44 = vor.u32 %v1061_v41, %v864_v40  ;;  %v1052_v48 = vld [vmem:[%s1616_s1 + $0xa4] sm:$0xf0]  ;;  %v860_v49 = vld [vmem:[%s1616_s1 + $0x120] sm:$0xf]  ;;  %v792_v51 = vld [vmem:[%s1616_s1 + $0x10] sm:$0xf]  ;;  %v797_v53 = vor.u32 %v1044_v46, %v796_v45 }
   0xd   :  { %269 = vmatpush.bf16.msra.mxu1 %v841_v25  ;;  %v1060_v50 = vld [vmem:[%s1616_s1 + $0x124] sm:$0xf0]  ;;  %v1043_v52 = vld [vmem:[%s1616_s1 + $0x14] sm:$0xf0]  ;;  %v824_v54 = vld [vmem:[%s1616_s1 + $0x90] sm:$0xf]  ;;  %v829_v58 = vor.u32 %v1052_v48, %v828_v47 }
   0xe   :  { %288 = vmatpush.bf16.msra.mxu2 %v873_v26  ;;  %v1051_v55 = vld [vmem:[%s1616_s1 + $0x94] sm:$0xf0]  ;;  %v856_v56 = vld [vmem:[%s1616_s1 + $0x110] sm:$0xf]  ;;  %v861_v59 = vor.u32 %v1060_v50, %v860_v49 }
   0xf   :  { %v1059_v57 = vld [vmem:[%s1616_s1 + $0x114] sm:$0xf0] }
  0x10   :  { %251 = vmatpush.bf16.msra.mxu0 %v805_v33 }
  0x11   :  { %270 = vmatpush.bf16.msra.mxu1 %v837_v34 }
  0x12   :  { %289 = vmatpush.bf16.msra.mxu2 %v869_v35 }
  0x14   :  { %252 = vmatpush.bf16.msra.mxu0 %v801_v42 }
  0x15   :  { %271 = vmatpush.bf16.msra.mxu1 %v833_v43 }
  0x16   :  { %290 = vmatpush.bf16.msra.mxu2 %v865_v44 }
  0x17   :  { %8 = vsyncpa [#allocation4], 0  ;;  %v793_v60 = vor.u32 %v1043_v52, %v792_v51  ;;  %v825_v61 = vor.u32 %v1051_v55, %v824_v54  ;;  %v857_v62 = vor.u32 %v1059_v57, %v856_v56  ;;  %v788_v63 = vld [vmem:[%s1616_s1] sm:$0xf]  ;;  %v1042_v0 = vld [vmem:[%s1616_s1 + $0x4] sm:$0xf0] }
  0x18   :  { %253 = vmatpush.bf16.msra.mxu0 %v797_v53  ;;  %v820_v1 = vld [vmem:[%s1616_s1 + $0x80] sm:$0xf]  ;;  %v1050_v2 = vld [vmem:[%s1616_s1 + $0x84] sm:$0xf0]  ;;  %v789_v5 = vor.u32 %v1042_v0, %v788_v63  ;;  %v1037_v7 = vld [vmem:[%s1615_s0 + $0x8] sm:$0xf0] }
  0x19   :  { %272 = vmatpush.bf16.msra.mxu1 %v829_v58  ;;  %v852_v3 = vld [vmem:[%s1616_s1 + $0x100] sm:$0xf]  ;;  %v1058_v4 = vld [vmem:[%s1616_s1 + $0x104] sm:$0xf0]  ;;  %v1036_v8 = vld [vmem:[%s1615_s0 + $0x4] sm:$0xf]  ;;  %v821_v9 = vor.u32 %v1050_v2, %v820_v1 }
  0x1a   :  { %291 = vmatpush.bf16.msra.mxu2 %v861_v59  ;;  %v764_v6 = vld [vmem:[%s1615_s0] sm:$0xf]  ;;  %v853_v10 = vor.u32 %v1058_v4, %v852_v3  ;;  %v766_v11 = vld [vmem:[%s1615_s0 + $0xc] sm:$0xf0]  ;;  %v772_v12 = vld [vmem:[%s1615_s0 + $0x8] sm:$0xf] }
  0x1b   :  { %v1038_v13 = vld [vmem:[%s1615_s0 + $0x10] sm:$0xf0]  ;;  %v765_v14 = vor.u32 %v1037_v7, %v764_v6  ;;  %v769_v15 = vor.u32 %v1036_v8, %v766_v11  ;;  %v776_v17 = vld [vmem:[%s1615_s0 + $0x18] sm:$0xf]  ;;  %v1040_v18 = vld [vmem:[%s1615_s0 + $0x20] sm:$0xf0] }
  0x1c   :  { %254 = vmatpush.bf16.msra.mxu0 %v793_v60  ;;  %v773_v16 = vor.u32 %v1038_v13, %v772_v12  ;;  %v1039_v19 = vld [vmem:[%s1615_s0 + $0x1c] sm:$0xf]  ;;  %v778_v20 = vld [vmem:[%s1615_s0 + $0x24] sm:$0xf0]  ;;  %v784_v21 = vld [vmem:[%s1615_s0 + $0x20] sm:$0xf]  ;;  %v777_v23 = vor.u32 %v1040_v18, %v776_v17 }
  0x1d   :  { %273 = vmatpush.bf16.msra.mxu1 %v825_v61  ;;  %v1041_v22 = vld [vmem:[%s1615_s0 + $0x28] sm:$0xf0]  ;;  %v781_v24 = vor.u32 %v1039_v19, %v778_v20  ;;  %s1142_s0 = smov 96   ;;  %v1108_v48 = vld [vmem:[%s1617_s2] ss:$0 sm:$0xff]  ;;  %vm331_vm0 = vcmask 254976  }
  0x1e   :  { %292 = vmatpush.bf16.msra.mxu2 %v857_v62  ;;  %v785_v25 = vor.u32 %v1041_v22, %v784_v21  ;;  %v1109_v51 = vld [vmem:[%s1617_s2 + $0x1] ss:$0 sm:$0xff]  ;;  %v1110_v53 = vld [vmem:[%s1617_s2 + $0x2] ss:$0 sm:$0xff]  ;;  %s1143_s30 = smov 32   ;;  %s1144_s4 = smov 64  }
  0x1f   :  { %vm340_vm1 = vcmask 517376   ;;  %vm348_vm2 = vcmask 779776   ;;  %v1006_v6 = vld [vmem:[%s1616_s1 + $0x278] sm:$0xf0]  ;;  %v940_v7 = vld [vmem:[%s1616_s1 + $0x1f0] sm:$0xf] }
  0x20   :  { %255 = vmatpush.bf16.msra.mxu0 %v789_v5  ;;  %v1096_v5 = vld [vmem:[%s1616_s1 + $0x274] sm:$0xf]  ;;  %v1097_v11 = vld [vmem:[%s1616_s1 + $0x274] sm:$0xf0]  ;;  %v998_v18 = vld [vmem:[%s1616_s1 + $0x268] sm:$0xf0] }
  0x21   :  { %274 = vmatpush.bf16.msra.mxu1 %v821_v9  ;;  %v1009_v8 = vor.u32 %v1096_v5, %v1006_v6  ;;  %v1081_v9 = vld [vmem:[%s1616_s1 + $0x1f4] sm:$0xf0]  ;;  %v932_v19 = vld [vmem:[%s1616_s1 + $0x1e0] sm:$0xf]  ;;  %v1079_v20 = vld [vmem:[%s1616_s1 + $0x1e4] sm:$0xf0] }
  0x22   :  { %293 = vmatpush.bf16.msra.mxu2 %v853_v10  ;;  %v1004_v10 = vld [vmem:[%s1616_s1 + $0x270] sm:$0xf]  ;;  %v941_v12 = vor.u32 %v1081_v9, %v940_v7  ;;  %v933_v22 = vor.u32 %v1079_v20, %v932_v19  ;;  %vm356_vm3 = vcmask 1042176   ;;  %v900_v5 = vld [vmem:[%s1616_s1 + $0x1a0] sm:$0xf]  ;;  %vm690_vm4 = vcmask 523264  }
  0x23   :  { %256 = vmatmul.bf16.vlgmr.msra.gmra.mxu0 %v765_v14  ;;  %v1005_v13 = vor.u32 %v1097_v11, %v1004_v10  ;;  %v1080_v14 = vld [vmem:[%s1616_s1 + $0x1f4] sm:$0xf]  ;;  %v1071_v7 = vld [vmem:[%s1616_s1 + $0x1a4] sm:$0xf0]  ;;  %v892_v19 = vld [vmem:[%s1616_s1 + $0x190] sm:$0xf] }
  0x24   :  { %275 = vmatmul.bf16.vlgmr.msra.gmra.mxu1 %v769_v15  ;;  %v942_v15 = vld [vmem:[%s1616_s1 + $0x1f8] sm:$0xf0]  ;;  %582 = vmatpush.bf16.msra.mxu3 %v941_v12  ;;  %v1087_v9 = vld [vmem:[%s1616_s1 + $0x224] sm:$0xf0]  ;;  %v901_v11 = vor.u32 %v1071_v7, %v900_v5  ;;  %v1069_v20 = vld [vmem:[%s1616_s1 + $0x194] sm:$0xf0] }
  0x25   :  { %294 = vmatmul.bf16.vlgmr.msra.gmra.mxu2 %v773_v16  ;;  %v1094_v16 = vld [vmem:[%s1616_s1 + $0x264] sm:$0xf]  ;;  %v945_v17 = vor.u32 %v1080_v14, %v942_v15  ;;  %595 = vmatpush.bf16.msrb.mxu0 %v1005_v13  ;;  %v902_v14 = vld [vmem:[%s1616_s1 + $0x1a8] sm:$0xf0]  ;;  %v1103_v7 = vld [vmem:[%s1616_s1 + $0x2d4] sm:$0xf0] }
  0x26   :  { %621 = vmatpush.bf16.msrb.mxu2 %v1009_v8  ;;  %v1001_v21 = vor.u32 %v1094_v16, %v998_v18  ;;  %v964_v8 = vld [vmem:[%s1616_s1 + $0x220] sm:$0xf]  ;;  %v1070_v13 = vld [vmem:[%s1616_s1 + $0x1a4] sm:$0xf]  ;;  %v1084_v16 = vld [vmem:[%s1616_s1 + $0x214] sm:$0xf] }
  0x27   :  { %608 = vmatpush.bf16.msrb.mxu1 %v945_v17  ;;  %v965_v12 = vor.u32 %v1087_v9, %v964_v8  ;;  %v905_v15 = vor.u32 %v1070_v13, %v902_v14  ;;  %v958_v17 = vld [vmem:[%s1616_s1 + $0x218] sm:$0xf0]  ;;  %v1029_v8 = vld [vmem:[%s1616_s1 + $0x2c0] sm:$0xf]  ;;  %vm727_vm5 = vcmask 261120   ;;  %s1145_s29 = smov [#allocation3]  }
  0x28   :  { %583 = vmatpush.bf16.msra.mxu3 %v933_v22  ;;  %v961_v18 = vor.u32 %v1084_v16, %v958_v17  ;;  %v893_v22 = vor.u32 %v1069_v20, %v892_v19  ;;  %s753_s6 = sshll.u32 %s1618_s3, 4  ;;  %vm744_vm6 = vcmask 74752   ;;  %s754_s6 = int_to_ptr.hbm [resolvable:$true] %s753_s6 }
  0x2a   :  { %622 = vmatpush.bf16.msrb.mxu2 %v1001_v21  ;;  %v956_v21 = vld [vmem:[%s1616_s1 + $0x210] sm:$0xf] }
  0x33   :  { %261 = vmatmul.bf16.gmra.mxu0 %v777_v23  ;;  %v996_v23 = vld [vmem:[%s1616_s1 + $0x260] sm:$0xf] }
  0x34   :  { %280 = vmatmul.bf16.gmra.mxu1 %v781_v24  ;;  %v1095_v24 = vld [vmem:[%s1616_s1 + $0x264] sm:$0xf0] }
  0x35   :  { %299 = vmatmul.bf16.gmra.mxu2 %v785_v25  ;;  %v1078_v25 = vld [vmem:[%s1616_s1 + $0x1e4] sm:$0xf] }
  0xa0   :  { %v257_v26 = vpop.f32.mrf.mxu0 }
  0xa1   :  { %v276_v27 = vpop.f32.mrf.mxu1 }
  0xa2   :  { %v277_v34 = vadd.f32 %v276_v27, %v257_v26  ;;  %v997_v26 = vor.u32 %v1095_v24, %v996_v23  ;;  %v934_v27 = vld [vmem:[%s1616_s1 + $0x1e8] sm:$0xf0]  ;;  %v1085_v23 = vld [vmem:[%s1616_s1 + $0x214] sm:$0xf0]  ;;  %v1068_v24 = vld [vmem:[%s1616_s1 + $0x194] sm:$0xf] }
  0xa4   :  { %596 = vmatpush.bf16.msrb.mxu0 %v997_v26  ;;  %v957_v26 = vor.u32 %v1085_v23, %v956_v21  ;;  %v1113_v21 = vld [vmem:[%s1617_s2 + $0x5] ss:$0 sm:$0xff] }
  0xa8   :  { %v295_v28 = vpop.f32.mrf.mxu2  ;;  %v259_v29 = vpop.f32.mrf.mxu0 }
  0xa9   :  { %v278_v30 = vpop.f32.mrf.mxu1  ;;  %v296_v37 = vadd.f32 %v295_v28, %v277_v34  ;;  %v1092_v28 = vld [vmem:[%s1616_s1 + $0x254] sm:$0xf]  ;;  %v988_v34 = vld [vmem:[%s1616_s1 + $0x250] sm:$0xf] }
  0xaa   :  { %v279_v42 = vadd.f32 %v278_v30, %v259_v29  ;;  %v990_v29 = vld [vmem:[%s1616_s1 + $0x258] sm:$0xf0] }
  0xb0   :  { %v297_v31 = vpop.f32.mrf.mxu2  ;;  %v262_v32 = vpop.f32.mrf.mxu0 }
  0xb1   :  { %v281_v33 = vpop.f32.mrf.mxu1  ;;  %v298_v45 = vadd.f32 %v297_v31, %v279_v42  ;;  %v937_v31 = vor.u32 %v1078_v25, %v934_v27  ;;  %v1090_v42 = vld [vmem:[%s1616_s1 + $0x244] sm:$0xf]  ;;  %v894_v25 = vld [vmem:[%s1616_s1 + $0x198] sm:$0xf0] }
  0xb2   :  { %v282_v35 = vadd.f32 %v281_v33, %v262_v32  ;;  %v924_v32 = vld [vmem:[%s1616_s1 + $0x1d0] sm:$0xf]  ;;  %v1077_v33 = vld [vmem:[%s1616_s1 + $0x1d4] sm:$0xf0]  ;;  %v897_v27 = vor.u32 %v1068_v24, %v894_v25  ;;  %v1114_v25 = vld [vmem:[%s1617_s2 + $0x6] ss:$0 sm:$0xff] }
  0xb3   :  { %609 = vmatpush.bf16.msrb.mxu1 %v937_v31 }
  0xb8   :  { %v300_v36 = vpop.f32.mrf.mxu2  ;;  %v264_v40 = vpop.f32.mrf.mxu0 }
  0xb9   :  { %v301_v38 = vadd.f32 %v300_v36, %v282_v35  ;;  %v283_v41 = vpop.f32.mrf.mxu1  ;;  %v993_v36 = vor.u32 %v1092_v28, %v990_v29  ;;  %v1082_v28 = vld [vmem:[%s1616_s1 + $0x204] sm:$0xf]  ;;  %v950_v29 = vld [vmem:[%s1616_s1 + $0x208] sm:$0xf0] }
  0xba   :  { %v284_v43 = vadd.f32 %v283_v41, %v264_v40  ;;  %v926_v41 = vld [vmem:[%s1616_s1 + $0x1d8] sm:$0xf0]  ;;  %v953_v31 = vor.u32 %v1082_v28, %v950_v29 }
  0xbb   :  { %v305_v39 = vmax.f32 %v296_v37, %v301_v38  ;;  %v1093_v37 = vld [vmem:[%s1616_s1 + $0x254] sm:$0xf0]  ;;  %v1076_v38 = vld [vmem:[%s1616_s1 + $0x1d4] sm:$0xf]  ;;  %623 = vmatpush.bf16.msrb.mxu2 %v993_v36 }
  0xbc   :  { %v989_v40 = vor.u32 %v1093_v37, %v988_v34  ;;  %v1083_v34 = vld [vmem:[%s1616_s1 + $0x204] sm:$0xf0]  ;;  %v1066_v37 = vld [vmem:[%s1616_s1 + $0x184] sm:$0xf] }
  0xbd   :  { %309 = vrot.lane.b32.xlu0 %v305_v39, %s1142_s0 }
  0xbe   :  { %597 = vmatpush.bf16.msrb.mxu0 %v989_v40 }
  0xc0   :  { %v302_v44 = vpop.f32.mrf.mxu2 }
  0xc1   :  { %v303_v46 = vadd.f32 %v302_v44, %v284_v43  ;;  %v929_v43 = vor.u32 %v1076_v38, %v926_v41  ;;  %v982_v44 = vld [vmem:[%s1616_s1 + $0x248] sm:$0xf0] }
  0xc2   :  { %v886_v38 = vld [vmem:[%s1616_s1 + $0x188] sm:$0xf0] }
  0xc3   :  { %v306_v47 = vmax.f32 %v298_v45, %v303_v46  ;;  %v916_v45 = vld [vmem:[%s1616_s1 + $0x1c0] sm:$0xf]  ;;  %v1075_v46 = vld [vmem:[%s1616_s1 + $0x1c4] sm:$0xf0]  ;;  %610 = vmatpush.bf16.msrb.mxu1 %v929_v43 }
  0xc5   :  { %311 = vrot.lane.b32.xlu0 %v306_v47, %s1142_s0 }
 0x12f   :  { %v310_v49 = vpop.permute.xlu0 %309 }
 0x130   :  { %v315_v50 = vmax.f32 %v305_v39, %v310_v49  ;;  %v925_v39 = vor.u32 %v1077_v33, %v924_v32  ;;  %v1074_v49 = vld [vmem:[%s1616_s1 + $0x1c4] sm:$0xf]  ;;  %v1067_v32 = vld [vmem:[%s1616_s1 + $0x184] sm:$0xf0]  ;;  %v948_v33 = vld [vmem:[%s1616_s1 + $0x200] sm:$0xf] }
 0x131   :  { %v949_v36 = vor.u32 %v1083_v34, %v948_v33 }
 0x132   :  { %v319_v52 = vadd.f32 %v1108_v48, %v315_v50  ;;  %v985_v50 = vor.u32 %v1090_v42, %v982_v44  ;;  %584 = vmatpush.bf16.msra.mxu3 %v925_v39  ;;  %v889_v39 = vor.u32 %v1066_v37, %v886_v38 }
 0x134   :  { %v321_v54 = vmax.f32 %v319_v52, 0.0  ;;  %v917_v52 = vor.u32 %v1075_v46, %v916_v45  ;;  %624 = vmatpush.bf16.msrb.mxu2 %v985_v50 }
 0x136   :  { %v325_v55 = vmul.f32 %v1109_v51, %v321_v54  ;;  %585 = vmatpush.bf16.msra.mxu3 %v917_v52 }
 0x137   :  { %v312_v56 = vpop.permute.xlu0 %311 }
 0x138   :  { %v329_v57 = vadd.f32 %v1110_v53, %v325_v55  ;;  %v316_v58 = vmax.f32 %v306_v47, %v312_v56  ;;  %v980_v47 = vld [vmem:[%s1616_s1 + $0x240] sm:$0xf]  ;;  %v1088_v55 = vld [vmem:[%s1616_s1 + $0x234] sm:$0xf]  ;;  %v974_v56 = vld [vmem:[%s1616_s1 + $0x238] sm:$0xf0] }
 0x13a   :  { %334 = vst.sshfl [vmem:[#allocation1] sm:$0xff pattern:$0x73625140] %v329_v57  ;;  %v320_v59 = vadd.f32 %v1108_v48, %v316_v58  ;;  %v1091_v48 = vld [vmem:[%s1616_s1 + $0x244] sm:$0xf0]  ;;  %v977_v58 = vor.u32 %v1088_v55, %v974_v56 }
 0x13b   :  { %332 = vst.msk [vmem:[#allocation2] sm:$0x3] %vm331_vm0, %v329_v57 }
 0x13c   :  { %v322_v60 = vmax.f32 %v320_v59, 0.0  ;;  %v1073_v59 = vld [vmem:[%s1616_s1 + $0x1b4] sm:$0xf0]  ;;  %625 = vmatpush.bf16.msrb.mxu2 %v977_v58  ;;  %v1024_v58 = vld [vmem:[%s1616_s1 + $0x2b0] sm:$0xf] }
 0x13e   :  { %v326_v61 = vmul.f32 %v1109_v51, %v322_v60  ;;  %v918_v51 = vld [vmem:[%s1616_s1 + $0x1c8] sm:$0xf0]  ;;  %v972_v60 = vld [vmem:[%s1616_s1 + $0x230] sm:$0xf] }
 0x13f   :  { %v921_v54 = vor.u32 %v1074_v49, %v918_v51 }
 0x140   :  { %v330_v62 = vadd.f32 %v1110_v53, %v326_v61  ;;  %v981_v53 = vor.u32 %v1091_v48, %v980_v47  ;;  %v1089_v61 = vld [vmem:[%s1616_s1 + $0x234] sm:$0xf0] }
 0x141   :  { %v336_v63 = vld [vmem:[#allocation1 + $0x1] ss:$4 sm:$0xff]  ;;  %611 = vmatpush.bf16.msrb.mxu1 %v921_v54 }
 0x142   :  { %337 = vrot.lane.b32.xlu1 %v336_v63, %s1143_s30  ;;  %342 = vst.sshfl [vmem:[#allocation1] sm:$0xff pattern:$0x73625140] %v329_v57  ;;  %598 = vmatpush.bf16.msrb.mxu0 %v981_v53  ;;  %v973_v63 = vor.u32 %v1089_v61, %v972_v60  ;;  %v1020_v61 = vld [vmem:[%s1616_s1 + $0x2a0] sm:$0xf] }
 0x143   :  { %358 = vst.msk [vmem:[#allocation2 + $0x2] sm:$0x3] %vm331_vm0, %v330_v62 }
 0x146   :  { %599 = vmatpush.bf16.msrb.mxu0 %v973_v63 }
 0x149   :  { %v344_v0 = vld [vmem:[#allocation1 + $0x2] ss:$4 sm:$0xff] }
 0x14a   :  { %345 = vrot.lane.b32.xlu2 %v344_v0, %s1144_s4  ;;  %350 = vst.sshfl [vmem:[#allocation1] sm:$0xff pattern:$0x73625140] %v329_v57  ;;  %v908_v57 = vld [vmem:[%s1616_s1 + $0x1b0] sm:$0xf]  ;;  %600 = vmatpush.bf16.msrb.mxu0 %v965_v12 }
 0x14b   :  { %v1072_v0 = vld [vmem:[%s1616_s1 + $0x1b4] sm:$0xf] }
 0x14e   :  { %601 = vmatpush.bf16.msrb.mxu0 %v957_v26 }
 0x151   :  { %v352_v1 = vld [vmem:[#allocation1 + $0x3] ss:$4 sm:$0xff] }
 0x152   :  { %353 = vrot.lane.b32.xlu0 %v352_v1, %s1142_s0  ;;  %360 = vst.sshfl [vmem:[#allocation1] sm:$0xff pattern:$0x73625140] %v330_v62  ;;  %v910_v1 = vld [vmem:[%s1616_s1 + $0x1b8] sm:$0xf0]  ;;  %602 = vmatpush.bf16.msrb.mxu0 %v949_v36 }
 0x159   :  { %v362_v2 = vld [vmem:[#allocation1 + $0x1] ss:$4 sm:$0xff] }
 0x15a   :  { %363 = vrot.lane.b32.xlu1 %v362_v2, %s1143_s30  ;;  %367 = vst.sshfl [vmem:[#allocation1] sm:$0xff pattern:$0x73625140] %v330_v62  ;;  %v913_v2 = vor.u32 %v1072_v0, %v910_v1  ;;  %v1016_v0 = vld [vmem:[%s1616_s1 + $0x290] sm:$0xf]  ;;  %s751_s30 = sshll.u32 %s1145_s29, 4  ;;  %s752_s30 = int_to_ptr.vmem [resolvable:$true] %s751_s30 }
 0x15b   :  { %v1099_v1 = vld [vmem:[%s1616_s1 + $0x294] sm:$0xf0] }
 0x15c   :  { %612 = vmatpush.bf16.msrb.mxu1 %v913_v2  ;;  %v1017_v2 = vor.u32 %v1099_v1, %v1016_v0 }
 0x160   :  { %613 = vmatpush.bf16.msrb.mxu1 %v905_v15  ;;  %v1111_v15 = vld [vmem:[%s1617_s2 + $0x3] ss:$0 sm:$0xff] }
 0x161   :  { %v369_v3 = vld [vmem:[#allocation1 + $0x2] ss:$4 sm:$0xff] }
 0x162   :  { %370 = vrot.lane.b32.xlu2 %v369_v3, %s1144_s4  ;;  %374 = vst.sshfl [vmem:[#allocation1] sm:$0xff pattern:$0x73625140] %v330_v62  ;;  %v909_v62 = vor.u32 %v1073_v59, %v908_v57  ;;  %v1086_v3 = vld [vmem:[%s1616_s1 + $0x224] sm:$0xf] }
 0x163   :  { %v1101_v59 = vld [vmem:[%s1616_s1 + $0x2b4] sm:$0xf0] }
 0x164   :  { %586 = vmatpush.bf16.msra.mxu3 %v909_v62  ;;  %614 = vmatpush.bf16.msrb.mxu1 %v897_v27  ;;  %v1025_v60 = vor.u32 %v1101_v59, %v1024_v58  ;;  %v1100_v62 = vld [vmem:[%s1616_s1 + $0x2a4] sm:$0xf0] }
 0x165   :  { %v1021_v63 = vor.u32 %v1100_v62, %v1020_v61 }
 0x168   :  { %587 = vmatpush.bf16.msra.mxu3 %v901_v11  ;;  %615 = vmatpush.bf16.msrb.mxu1 %v889_v39 }
 0x169   :  { %v376_v4 = vld [vmem:[#allocation1 + $0x3] ss:$4 sm:$0xff] }
 0x16a   :  { %377 = vrot.lane.b32.xlu1 %v376_v4, %s1142_s0  ;;  %v966_v4 = vld [vmem:[%s1616_s1 + $0x228] sm:$0xf0] }
 0x16b   :  { %v969_v6 = vor.u32 %v1086_v3, %v966_v4  ;;  %v1012_v3 = vld [vmem:[%s1616_s1 + $0x280] sm:$0xf]  ;;  %v1098_v4 = vld [vmem:[%s1616_s1 + $0x284] sm:$0xf0] }
 0x16c   :  { %588 = vmatpush.bf16.msra.mxu3 %v893_v22  ;;  %v1013_v5 = vor.u32 %v1098_v4, %v1012_v3 }
 0x16d   :  { %626 = vmatpush.bf16.msrb.mxu2 %v969_v6  ;;  %v1033_v6 = vld [vmem:[%s1616_s1 + $0x2d0] sm:$0xf] }
 0x16e   :  { %v1034_v9 = vor.u32 %v1103_v7, %v1033_v6 }
 0x171   :  { %627 = vmatpush.bf16.msrb.mxu2 %v961_v18  ;;  %v1112_v18 = vld [vmem:[%s1617_s2 + $0x4] ss:$0 sm:$0xff] }
 0x175   :  { %628 = vmatpush.bf16.msrb.mxu2 %v953_v31  ;;  %v1115_v31 = vld [vmem:[%s1617_s2 + $0x7] ss:$0 sm:$0xff] }
 0x1a4   :  { %v346_v35 = vpop.permute.xlu2 %345 }
 0x1b4   :  { %v338_v30 = vpop.permute.xlu1 %337 }
 0x1b5   :  { %341 = vst.msk [vmem:[#allocation2] sm:$0x3] %vm340_vm1, %v338_v30  ;;  %v884_v30 = vld [vmem:[%s1616_s1 + $0x180] sm:$0xf] }
 0x1b6   :  { %349 = vst.msk [vmem:[#allocation2] sm:$0x3] %vm348_vm2, %v346_v35  ;;  %v885_v35 = vor.u32 %v1067_v32, %v884_v30 }
 0x1b8   :  { %589 = vmatpush.bf16.msra.mxu3 %v885_v35 }
 0x1bc   :  { %v371_v41 = vpop.permute.xlu2 %370  ;;  %698 = vmatpush.bf16.msrb.mxu3 %v1025_v60 }
 0x1c0   :  { %699 = vmatpush.bf16.msrb.mxu3 %v1021_v63 }
 0x1c4   :  { %v354_v10 = vpop.permute.xlu0 %353  ;;  %700 = vmatpush.bf16.msrb.mxu3 %v1017_v2 }
 0x1c5   :  { %357 = vst.msk [vmem:[#allocation2] sm:$0x3] %vm356_vm3, %v354_v10  ;;  %v1102_v10 = vld [vmem:[%s1616_s1 + $0x2c4] sm:$0xf0] }
 0x1c6   :  { %v1030_v11 = vor.u32 %v1102_v10, %v1029_v8 }
 0x1c8   :  { %701 = vmatpush.bf16.msrb.mxu3 %v1013_v5 }
 0x1cc   :  { %v364_v40 = vpop.permute.xlu1 %363 }
 0x1cd   :  { %366 = vst.msk [vmem:[#allocation2 + $0x2] sm:$0x3] %vm340_vm1, %v364_v40 }
 0x1ce   :  { %373 = vst.msk [vmem:[#allocation2 + $0x2] sm:$0x3] %vm348_vm2, %v371_v41 }
 0x1dc   :  { %v378_v42 = vpop.permute.xlu1 %377 }
 0x1dd   :  { %380 = vst.msk [vmem:[#allocation2 + $0x2] sm:$0x3] %vm356_vm3, %v378_v42 }
 0x1e4   :  { %v381_v43 = vld [vmem:[#allocation2] sm:$0xf] }
 0x1e5   :  { %383 = vst [vmem:[#allocation1] ss:$4 sm:$0xff] %v381_v43 }
 0x1ec   :  { %v384_v44 = vld.sshfl [vmem:[#allocation1] sm:$0xff pattern:$0x73625140]  ;;  %v385_v45 = vld.sshfl [vmem:[#allocation1 + $0x8] sm:$0xff pattern:$0x73625140] }
 0x1ed   :  { %v388_v46 = vpack.c.bf16 %v384_v44, %v384_v44  ;;  %v389_v47 = vpack.c.bf16 %v385_v45, %v385_v45 }
 0x1ef   :  { %590 = vmatmul.bf16.vlgmr.msra.gmra.mxu3 %v388_v46  ;;  %603 = vmatmul.bf16.vlgmr.msrb.gmra.mxu0 %v389_v47 }
 0x1f0   :  { %616 = vmatmul.bf16.vlgmr.msrb.gmra.mxu1 %v388_v46  ;;  %629 = vmatmul.bf16.vlgmr.msrb.gmra.mxu2 %v389_v47 }
 0x1f1   :  { %737 = vmatpush.bf16.msra.mxu3 %v1034_v9 }
 0x1f5   :  { %738 = vmatpush.bf16.msra.mxu3 %v1030_v11 }
 0x26c   :  { %v604_v48 = vpop.f32.mrf.mxu0 }
 0x26d   :  { %v617_v49 = vpop.f32.mrf.mxu1 }
 0x272   :  { %v591_v50 = vpop.f32.mrf.mxu3 }
 0x273   :  { %v605_v51 = vadd.f32 %v604_v48, %v591_v50  ;;  %v630_v52 = vpop.f32.mrf.mxu2 }
 0x274   :  { %v631_v53 = vadd.f32 %v630_v52, %v617_v49  ;;  %v606_v54 = vpop.f32.mrf.mxu0 }
 0x275   :  { %v619_v55 = vpop.f32.mrf.mxu1  ;;  %635 = vrot.lane.b32.xlu2 %v605_v51, %s1144_s4 }
 0x276   :  { %640 = vrot.lane.b32.xlu0 %v631_v53, %s1144_s4 }
 0x27a   :  { %v593_v56 = vpop.f32.mrf.mxu3 }
 0x27b   :  { %v632_v57 = vpop.f32.mrf.mxu2 }
 0x2cf   :  { %v636_v12 = vpop.permute.xlu2 %635 }
 0x2d0   :  { %v638_v14 = vmax.f32 %v605_v51, %v636_v12 }
 0x2e8   :  { %v641_v13 = vpop.permute.xlu0 %640 }
 0x2e9   :  { %v643_v16 = vmax.f32 %v631_v53, %v641_v13 }
 0x2eb   :  { %v644_v17 = vmax.f32 %v638_v14, %v643_v16 }
 0x2ed   :  { %v647_v19 = vadd.f32 %v1111_v15, %v644_v17 }
 0x2ef   :  { %v648_v20 = vmax.f32 %v647_v19, 0.0 }
 0x2f1   :  { %v651_v22 = vmul.f32 %v1112_v18, %v648_v20 }
 0x2f3   :  { %v654_v23 = vadd.f32 %v1113_v21, %v651_v22 }
 0x2f5   :  { %v655_v24 = vpack.c.bf16 %v654_v23, %v654_v23 }
 0x2f7   :  { %1026 = vmatmul.msk.bf16.vlgmr.msrb.gmra.mxu3 %vm690_vm4, %v655_v24 }
 0x37a   :  { %v703_v26 = vpop.f32.mrf.mxu3 }
 0x37b   :  { %v704_v27 = vadd.f32 %v1114_v25, %v703_v26 }
 0x37d   :  { %v707_v28 = vmax.f32 %v704_v27, 0.0 }
 0x37f   :  { %v708_v29 = vpack.c.bf16 %v707_v28, %v707_v28 }
 0x381   :  { %1035 = vmatmul.msk.bf16.vlgmr.msra.gmra.mxu3 %vm727_vm5, %v708_v29 }
 0x382   :  { %v705_v30 = vpop.f32.mrf.mxu3 }
 0x404   :  { %v740_v32 = vpop.f32.mrf.mxu3 }
 0x405   :  { %v741_v33 = vadd.f32 %v1115_v31, %v740_v32 }
 0x407   :  { %745 = vst.msk [vmem:[#allocation3] sm:$0x3] %vm744_vm6, %v741_v33 }
 0x408   :  { %756 = dma.vmem_to_hbm [thread:$0]  %s752_s30, 32, %s754_s6, [#allocation4]  }
 0x40c   :  { %v742_v34 = vpop.f32.mrf.mxu3 }
 0x40d   :  { %1140 = dma.done.wait [#allocation4], 32  }
 0x40e   :  { %1141 = vsyncadd [#allocation4], 4294967264 }
 0x40f   :  { %761 = vsyncpa [#allocation4], 1 }

</bundles_post_ra>
